<compile_context>
chip_gen: v7x
topology: tpu7x:2x2x1
jax: 0.10.0
libtpu: 0.0.40
codegen_flags: <defaults>
</compile_context>

<pallas_src>
import math
from functools import lru_cache

import numpy as np
import jax
import jax.numpy as jnp
from jax.experimental import pallas as pl
from jax.experimental.pallas import tpu as pltpu


def _round_up(x, m):
    return ((int(x) + m - 1) // m) * m


def _tile_bytes(rows, cols, itemsize):
    """VMEM footprint of a 2-D slab after (8,128) layout padding."""
    return _round_up(max(rows, 1), 8) * _round_up(max(cols, 1), 128) * int(itemsize)


# ----------------------------------------------------------------------------
# Host-side: 1-D linear-interpolation matrices (nitorch semantics), cached.
# ----------------------------------------------------------------------------
def _reflect_dct2_np(idx, n):
    """'dct2' / 'reflect' boundary: ...,1,0,0,1,...,n-1,n-1,n-2,..."""
    if n == 1:
        return np.zeros_like(idx)
    period = 2 * n
    idx = np.remainder(idx, period)
    return np.where(idx >= n, period - 1 - idx, idx)


@lru_cache(maxsize=None)
def _linear_resize_matrix(n_in, n_out, anchor='c', factor=None):
    """Dense (n_out, n_in) float32 matrix for 1-D linear resize,
    bound='dct2', extrapolate=True (no FOV masking)."""
    a = str(anchor)[0].lower()
    if a == 'c':        # centers (align corners)
        scale = (n_in - 1) / (n_out - 1) if n_out > 1 else 0.0
        shift = 0.0
    elif a == 'e':      # edges
        scale = n_in / n_out
        shift = 0.5 * (scale - 1.0)
    elif a == 'f':      # first
        scale = 1.0 / factor
        shift = 0.0
    else:               # 'l' last
        scale = 1.0 / factor
        shift = (n_in - 1) - (n_out - 1) * (1.0 / factor)

    dst = np.arange(n_out, dtype=np.float64)
    src = dst * scale + shift
    lo = np.floor(src)
    frac = (src - lo).astype(np.float32)
    i0 = lo.astype(np.int64)
    i1 = i0 + 1
    i0 = _reflect_dct2_np(i0, n_in)
    i1 = _reflect_dct2_np(i1, n_in)
    rows = np.arange(n_out)
    w = np.zeros((n_out, n_in), np.float32)
    np.add.at(w, (rows, i0), 1.0 - frac)
    np.add.at(w, (rows, i1), frac)
    return w


# ----------------------------------------------------------------------------
# Generation-aware VMEM budget and block-size selection.
# ----------------------------------------------------------------------------
def _vmem_limit_bytes():
    try:
        cap = int(pltpu.get_tpu_info().vmem_capacity_bytes)
    except Exception:
        cap = 64 * 1024 * 1024
    if cap >= 128 * 1024 * 1024:
        # v5e / v6e: 128 MiB physical VMEM; leave room for internal scratch.
        return 100 * 1024 * 1024
    # v7x (64 MiB per TensorCore) or unknown: stay conservative.
    return 48 * 1024 * 1024


def _pick_tb(n, per_slice_bytes, weight_bytes, vmem_limit):
    """Largest fused batch*channel block that fits the VMEM budget.

    Returns (tb, n_padded) with n_padded a multiple of tb."""
    headroom = 8 * 1024 * 1024
    # Budget weights at 2x (in case single-buffering is not honored).
    budget = vmem_limit - 2 * weight_bytes - headroom
    cap = max(1, budget // max(per_slice_bytes, 1))
    cap = int(min(cap, 64, n))
    if n >= 2:
        # Keep >= 2 grid steps: feeds both v7x TensorCores and enables
        # the software pipeline to actually overlap DMA with compute.
        cap = min(cap, max(1, n // 2))
    best = 1
    for d in range(1, cap + 1):
        if n % d == 0:
            best = d
    if 2 * best >= cap:
        return best, n              # a good divisor exists, no padding
    return cap, _round_up(n, cap)   # pad with zero slices instead


def _invariant_weight_spec(shape):
    """BlockSpec for a grid-invariant weight block (single-buffered)."""
    index_map = lambda i: (0,) * len(shape)
    try:
        return pl.BlockSpec(shape, index_map, pipeline_mode=pl.Buffered(1))
    except TypeError:   # older BlockSpec without pipeline_mode
        return pl.BlockSpec(shape, index_map)


# ----------------------------------------------------------------------------
# Pallas kernels (built per static shape / contraction order).
# ----------------------------------------------------------------------------
def _make_width_first_kernel(tb, hin_p, win, hout_p, wout_p, out_dtype, cdt):
    out_dtype = jnp.dtype(out_dtype)
    cdt = jnp.dtype(cdt)
    is_int = jnp.issubdtype(out_dtype, jnp.integer)

    def _cast(v):
        if is_int:
            v = jnp.round(v)
        return v.astype(out_dtype)

    def kernel(x_ref, ww_ref, wh_ref, o_ref, t1_ref, t2_ref, t3_ref):
        # Pass 1: contract Win on the lane dim as ONE tall matmul.
        x = x_ref[...].astype(cdt).reshape(tb * hin_p, win)
        t1_ref[...] = jnp.dot(
            x, ww_ref[...], preferred_element_type=jnp.float32
        ).reshape(tb, hin_p, wout_p)
        # Per-slice XLU transposes through VMEM scratch (bounded live ranges).
        for b in range(tb):
            t2_ref[b] = t1_ref[b].T.astype(cdt)              # (wout_p, hin_p)
        # Pass 2: contract Hin on the lane dim as ONE tall matmul.
        t3_ref[...] = jnp.dot(
            t2_ref[...].reshape(tb * wout_p, hin_p), wh_ref[...],
            preferred_element_type=jnp.float32
        ).reshape(tb, wout_p, hout_p)
        # Transpose back and store a lane-dense output block.
        for b in range(tb):
            o_ref[b] = _cast(t3_ref[b].T)                    # (hout_p, wout_p)

    scratch = [pltpu.VMEM((tb, hin_p, wout_p), jnp.float32),
               pltpu.VMEM((tb, wout_p, hin_p), cdt),
               pltpu.VMEM((tb, wout_p, hout_p), jnp.float32)]
    return kernel, scratch


def _make_height_first_kernel(tb, hin, win_p, hout_p, wout_p, out_dtype, cdt):
    out_dtype = jnp.dtype(out_dtype)
    cdt = jnp.dtype(cdt)
    is_int = jnp.issubdtype(out_dtype, jnp.integer)

    def _cast(v):
        if is_int:
            v = jnp.round(v)
        return v.astype(out_dtype)

    def kernel(x_ref, wh_ref, ww_ref, o_ref, t0_ref, t1_ref, t2_ref):
        # Per-slice XLU transposes of the input (overlap with MXU work).
        for b in range(tb):
            t0_ref[b] = x_ref[b].astype(cdt).T               # (win_p, hin)
        # Pass 1: contract Hin on the lane dim as ONE tall matmul.
        t1_ref[...] = jnp.dot(
            t0_ref[...].reshape(tb * win_p, hin), wh_ref[...],
            preferred_element_type=jnp.float32
        ).reshape(tb, win_p, hout_p)
        for b in range(tb):
            t2_ref[b] = t1_ref[b].T.astype(cdt)              # (hout_p, win_p)
        # Pass 2: contract Win on the lane dim; store is already (h, w)-major
        # and lane-dense (Wout padded to a multiple of 128).
        o = jnp.dot(t2_ref[...].reshape(tb * hout_p, win_p), ww_ref[...],
                    preferred_element_type=jnp.float32)
        o_ref[...] = _cast(o.reshape(tb, hout_p, wout_p))

    scratch = [pltpu.VMEM((tb, win_p, hin), cdt),
               pltpu.VMEM((tb, win_p, hout_p), jnp.float32),
               pltpu.VMEM((tb, hout_p, win_p), cdt)]
    return kernel, scratch


# ----------------------------------------------------------------------------
# Module wrapper
# ----------------------------------------------------------------------------
class Resize:
    """Pallas/JAX port of nitorch Resize (no learnable parameters).

    Only interpolation='linear' (order 1) and bound='dct2' are implemented
    (the module's defaults).  Set compute_dtype=jnp.bfloat16 for a faster,
    slightly less accurate MXU path."""

    def __init__(self, factor=None, shape=None, anchor='c',
                 interpolation='linear', bound='dct2', extrapolate=True,
                 compute_dtype=jnp.float32):
        self.factor = factor
        self.shape = shape
        self.anchor = anchor
        self.interpolation = interpolation
        self.bound = bound
        self.extrapolate = extrapolate
        self.compute_dtype = compute_dtype

    def __call__(self, image, affine=None, **overload):
        factor = overload.get('factor', self.factor)
        shape = overload.get('shape', self.shape)
        anchor = overload.get('anchor', self.anchor)
        interpolation = overload.get('interpolation', self.interpolation)
        bound = overload.get('bound', self.bound)

        if interpolation not in ('linear', 1):
            # TODO(synk): higher-order spline interpolation not implemented
            raise NotImplementedError('only linear interpolation supported')
        if bound not in ('dct2', 'reflect'):
            # TODO(synk): only dct2/reflect boundary implemented
            raise NotImplementedError('only dct2 boundary supported')

        B, C, Hin, Win = image.shape
        inshape = (Hin, Win)
        dim = 2

        if factor is not None:
            factors = list(factor) if isinstance(factor, (list, tuple)) \
                else [float(factor)] * dim
        else:
            factors = None
        if shape is not None:
            outshape = tuple(int(s) for s in shape)
        else:
            outshape = tuple(int(math.floor(s * f))
                             for s, f in zip(inshape, factors))
        if factors is None:
            factors = [o / i for o, i in zip(outshape, inshape)]
        Hout, Wout = outshape

        anchors = list(anchor) if isinstance(anchor, (list, tuple)) \
            else [anchor] * dim

        out_dtype = image.dtype
        cdt = jnp.dtype(self.compute_dtype)
        in_isize = jnp.dtype(image.dtype).itemsize
        out_isize = jnp.dtype(out_dtype).itemsize
        cdt_isize = cdt.itemsize

        # --- padded dims: sublane -> multiple of 8, output lane -> 128 ------
        hout_p = _round_up(Hout, 8)
        wout_p = _round_up(Wout, 128)
        hin_p_w = _round_up(Hin, 8)      # width-first pads input H
        win_p_h = _round_up(Win, 8)      # height-first pads input W

        # Pick contraction order minimizing MXU FLOPs on the padded shapes.
        flops_w = hin_p_w * wout_p * (Win + hout_p)
        flops_h = win_p_h * hout_p * (Hin + wout_p)
        width_first = flops_w <= flops_h

        wh_np = _linear_resize_matrix(Hin, Hout, anchors[0], float(factors[0]))
        ww_np = _linear_resize_matrix(Win, Wout, anchors[1], float(factors[1]))

        if width_first:
            hin_p, win_p = hin_p_w, Win
            ww = np.zeros((Win, wout_p), np.float32)
            ww[:, :Wout] = ww_np.T
            wh = np.zeros((hin_p, hout_p), np.float32)
            wh[:Hin, :Hout] = wh_np.T
            weights = [ww, wh]
            scr_b = (_tile_bytes(hin_p, wout_p, 4)
                     + _tile_bytes(wout_p, hin_p, cdt_isize)
                     + _tile_bytes(wout_p, hout_p, 4))
            weight_b = (_tile_bytes(Win, wout_p, cdt_isize)
                        + _tile_bytes(hin_p, hout_p, cdt_isize))
        else:
            hin_p, win_p = Hin, win_p_h
            wh = np.zeros((Hin, hout_p), np.float32)
            wh[:, :Hout] = wh_np.T
            ww = np.zeros((win_p, wout_p), np.float32)
            ww[:Win, :Wout] = ww_np.T
            weights = [wh, ww]
            scr_b = (_tile_bytes(win_p, Hin, cdt_isize)
                     + _tile_bytes(win_p, hout_p, 4)
                     + _tile_bytes(hout_p, win_p, cdt_isize))
            weight_b = (_tile_bytes(Hin, hout_p, cdt_isize)
                        + _tile_bytes(win_p, wout_p, cdt_isize))

        n = B * C
        per_slice = (2 * _tile_bytes(hin_p, win_p, in_isize)
                     + 2 * _tile_bytes(hout_p, wout_p, out_isize)
                     + scr_b)
        vmem_limit = _vmem_limit_bytes()
        tb, n_pad = _pick_tb(n, per_slice, weight_b, vmem_limit)

        xf = image.reshape(n, Hin, Win)
        pad_n, pad_h, pad_w = n_pad - n, hin_p - Hin, win_p - Win
        if pad_n or pad_h or pad_w:
            xf = jnp.pad(xf, ((0, pad_n), (0, pad_h), (0, pad_w)))

        if width_first:
            kernel, scratch = _make_width_first_kernel(
                tb, hin_p, win_p, hout_p, wout_p, out_dtype, cdt)
        else:
            kernel, scratch = _make_height_first_kernel(
                tb, hin_p, win_p, hout_p, wout_p, out_dtype, cdt)

        w_args = [jnp.asarray(w, dtype=cdt) for w in weights]
        in_specs = [pl.BlockSpec((tb, hin_p, win_p), lambda i: (i, 0, 0))]
        in_specs += [_invariant_weight_spec(w.shape) for w in w_args]

        out = pl.pallas_call(
            kernel,
            out_shape=jax.ShapeDtypeStruct((n_pad, hout_p, wout_p), out_dtype),
            grid=(n_pad // tb,),
            in_specs=in_specs,
            out_specs=pl.BlockSpec((tb, hout_p, wout_p), lambda i: (i, 0, 0)),
            scratch_shapes=scratch,
            compiler_params=pltpu.CompilerParams(
                dimension_semantics=("parallel",),
                vmem_limit_bytes=vmem_limit),
        )(xf, *w_args)

        out = out[:n, :Hout, :Wout].reshape(B, C, Hout, Wout)

        if affine is not None:
            # TODO(synk): orientation-matrix (affine) rescaling not implemented
            return out, affine
        return out


# ----------------------------------------------------------------------------
# Pure-JAX reference (align-corners bilinear) for correctness check
# ----------------------------------------------------------------------------
def _ref_resize_aligncorners(x, Hout, Wout):
    B, C, Hin, Win = x.shape
    ys = jnp.arange(Hout, dtype=jnp.float32) * ((Hin - 1) / (Hout - 1))
    xs = jnp.arange(Wout, dtype=jnp.float32) * ((Win - 1) / (Wout - 1))
    y0 = jnp.clip(jnp.floor(ys).astype(jnp.int32), 0, Hin - 1)
    x0 = jnp.clip(jnp.floor(xs).astype(jnp.int32), 0, Win - 1)
    fy = ys - y0
    fx = xs - x0
    y1 = jnp.clip(y0 + 1, 0, Hin - 1)
    x1 = jnp.clip(x0 + 1, 0, Win - 1)
    g = lambda yi, xi: x[:, :, yi][:, :, :, xi]
    fy = fy[None, None, :, None]
    fx = fx[None, None, None, :]
    top = g(y0, x0) * (1 - fx) + g(y0, x1) * fx
    bot = g(y1, x0) * (1 - fx) + g(y1, x1) * fx
    return top * (1 - fy) + bot * fy


if __name__ == "__main__":
    key = jax.random.PRNGKey(0)
    B, C, H, W = 2, 4, 16, 16
    x = jax.random.normal(key, (B, C, H, W), dtype=jnp.float32)

    # Test 1: isotropic 2x upsample.
    module = Resize(factor=2, anchor='c', interpolation='linear',
                    bound='dct2', extrapolate=True)
    out = jax.block_until_ready(module(x))
    assert out.shape == (B, C, 32, 32), out.shape
    ref = _ref_resize_aligncorners(x, 32, 32)
    err = float(jnp.max(jnp.abs(out - ref)))
    assert err < 1e-4, f"max abs err {err}"

    # Test 2: anisotropic resize (downsample H, upsample W) -> height-first.
    module2 = Resize(factor=(0.5, 4.0), anchor='c', interpolation='linear',
                     bound='dct2', extrapolate=True)
    out2 = jax.block_until_ready(module2(x))
    assert out2.shape == (B, C, 8, 64), out2.shape
    ref2 = _ref_resize_aligncorners(x, 8, 64)
    err2 = float(jnp.max(jnp.abs(out2 - ref2)))
    assert err2 < 1e-4, f"max abs err {err2}"

    # Test 3: strong H upsample on a non-square input -> width-first order.
    x3 = jax.random.normal(jax.random.PRNGKey(0), (B, C, 8, 32),
                           dtype=jnp.float32)
    module3 = Resize(factor=(16.0, 0.5), anchor='c', interpolation='linear',
                     bound='dct2', extrapolate=True)
    out3 = jax.block_until_ready(module3(x3))
    assert out3.shape == (B, C, 128, 16), out3.shape
    ref3 = _ref_resize_aligncorners(x3, 128, 16)
    err3 = float(jnp.max(jnp.abs(out3 - ref3)))
    assert err3 < 1e-4, f"max abs err {err3}"

    print("KERNEL_OK")
</pallas_src>

<mosaic_0001>
module attributes {stable_mosaic.version = 11 : i64} {
  func.func @kernel(%arg0: i32, %arg1: memref<4x16x16xf32, #tpu.memory_space<vmem>>, %arg2: memref<16x32xf32, #tpu.memory_space<vmem>>, %arg3: memref<16x128xf32, #tpu.memory_space<vmem>>, %arg4: memref<4x32x128xf32, #tpu.memory_space<vmem>>, %arg5: memref<4x16x16xf32, #tpu.memory_space<vmem>>, %arg6: memref<4x16x32xf32, #tpu.memory_space<vmem>>, %arg7: memref<4x32x16xf32, #tpu.memory_space<vmem>>) attributes {dimension_semantics = [#tpu.dimension_semantics<parallel>], iteration_bounds = array<i64: 2>, scalar_prefetch = 0 : i64, scratch_operands = 3 : i64, tpu.core_type = #tpu.core_type<tc>, window_params = [{transform_indices = @transform_0, window_bounds = array<i64: 4, 16, 16>}, {pipeline_mode = #tpu.pipeline_mode<synchronous>, transform_indices = @transform_1, window_bounds = array<i64: 16, 32>}, {pipeline_mode = #tpu.pipeline_mode<synchronous>, transform_indices = @transform_2, window_bounds = array<i64: 16, 128>}, {transform_indices = @transform_3, window_bounds = array<i64: 4, 32, 128>}]} {
    %c0 = arith.constant 0 : index
    %c0_0 = arith.constant 0 : index
    %c0_1 = arith.constant 0 : index
    %0 = vector.load %arg1[%c0, %c0_0, %c0_1] : memref<4x16x16xf32, #tpu.memory_space<vmem>>, vector<1x16x16xf32>
    %1 = vector.shape_cast %0 : vector<1x16x16xf32> to vector<16x16xf32>
    %2 = tpu.transpose %1, [1, 0] : vector<16x16xf32> -> vector<16x16xf32>
    %c0_2 = arith.constant 0 : index
    %c0_3 = arith.constant 0 : index
    %c0_4 = arith.constant 0 : index
    %3 = vector.load %arg5[%c0_2, %c0_3, %c0_4] : memref<4x16x16xf32, #tpu.memory_space<vmem>>, vector<1x16x16xf32>
    %4 = vector.shape_cast %3 : vector<1x16x16xf32> to vector<16x16xf32>
    %5 = vector.shape_cast %2 : vector<16x16xf32> to vector<1x16x16xf32>
    tpu.vector_store %arg5[%c0_2, %c0_3, %c0_4], %5 {strides = array<i32>} : memref<4x16x16xf32, #tpu.memory_space<vmem>>, vector<1x16x16xf32>,
    %c1 = arith.constant 1 : index
    %c0_5 = arith.constant 0 : index
    %c0_6 = arith.constant 0 : index
    %6 = vector.load %arg1[%c1, %c0_5, %c0_6] : memref<4x16x16xf32, #tpu.memory_space<vmem>>, vector<1x16x16xf32>
    %7 = vector.shape_cast %6 : vector<1x16x16xf32> to vector<16x16xf32>
    %8 = tpu.transpose %7, [1, 0] : vector<16x16xf32> -> vector<16x16xf32>
    %c1_7 = arith.constant 1 : index
    %c0_8 = arith.constant 0 : index
    %c0_9 = arith.constant 0 : index
    %9 = vector.load %arg5[%c1_7, %c0_8, %c0_9] : memref<4x16x16xf32, #tpu.memory_space<vmem>>, vector<1x16x16xf32>
    %10 = vector.shape_cast %9 : vector<1x16x16xf32> to vector<16x16xf32>
    %11 = vector.shape_cast %8 : vector<16x16xf32> to vector<1x16x16xf32>
    tpu.vector_store %arg5[%c1_7, %c0_8, %c0_9], %11 {strides = array<i32>} : memref<4x16x16xf32, #tpu.memory_space<vmem>>, vector<1x16x16xf32>,
    %c2 = arith.constant 2 : index
    %c0_10 = arith.constant 0 : index
    %c0_11 = arith.constant 0 : index
    %12 = vector.load %arg1[%c2, %c0_10, %c0_11] : memref<4x16x16xf32, #tpu.memory_space<vmem>>, vector<1x16x16xf32>
    %13 = vector.shape_cast %12 : vector<1x16x16xf32> to vector<16x16xf32>
    %14 = tpu.transpose %13, [1, 0] : vector<16x16xf32> -> vector<16x16xf32>
    %c2_12 = arith.constant 2 : index
    %c0_13 = arith.constant 0 : index
    %c0_14 = arith.constant 0 : index
    %15 = vector.load %arg5[%c2_12, %c0_13, %c0_14] : memref<4x16x16xf32, #tpu.memory_space<vmem>>, vector<1x16x16xf32>
    %16 = vector.shape_cast %15 : vector<1x16x16xf32> to vector<16x16xf32>
    %17 = vector.shape_cast %14 : vector<16x16xf32> to vector<1x16x16xf32>
    tpu.vector_store %arg5[%c2_12, %c0_13, %c0_14], %17 {strides = array<i32>} : memref<4x16x16xf32, #tpu.memory_space<vmem>>, vector<1x16x16xf32>,
    %c3 = arith.constant 3 : index
    %c0_15 = arith.constant 0 : index
    %c0_16 = arith.constant 0 : index
    %18 = vector.load %arg1[%c3, %c0_15, %c0_16] : memref<4x16x16xf32, #tpu.memory_space<vmem>>, vector<1x16x16xf32>
    %19 = vector.shape_cast %18 : vector<1x16x16xf32> to vector<16x16xf32>
    %20 = tpu.transpose %19, [1, 0] : vector<16x16xf32> -> vector<16x16xf32>
    %c3_17 = arith.constant 3 : index
    %c0_18 = arith.constant 0 : index
    %c0_19 = arith.constant 0 : index
    %21 = vector.load %arg5[%c3_17, %c0_18, %c0_19] : memref<4x16x16xf32, #tpu.memory_space<vmem>>, vector<1x16x16xf32>
    %22 = vector.shape_cast %21 : vector<1x16x16xf32> to vector<16x16xf32>
    %23 = vector.shape_cast %20 : vector<16x16xf32> to vector<1x16x16xf32>
    tpu.vector_store %arg5[%c3_17, %c0_18, %c0_19], %23 {strides = array<i32>} : memref<4x16x16xf32, #tpu.memory_space<vmem>>, vector<1x16x16xf32>,
    %c0_20 = arith.constant 0 : index
    %c0_21 = arith.constant 0 : index
    %c0_22 = arith.constant 0 : index
    %24 = vector.load %arg5[%c0_20, %c0_21, %c0_22] : memref<4x16x16xf32, #tpu.memory_space<vmem>>, vector<4x16x16xf32>
    %25 = vector.shape_cast %24 : vector<4x16x16xf32> to vector<64x16xf32>
    %c0_23 = arith.constant 0 : index
    %c0_24 = arith.constant 0 : index
    %26 = vector.load %arg2[%c0_23, %c0_24] : memref<16x32xf32, #tpu.memory_space<vmem>>, vector<16x32xf32>
    %cst = arith.constant dense<0.000000e+00> : vector<64x32xf32>
    %27 = tpu.matmul %25, %26, %cst {dimension_numbers = #tpu.dot_dimension_numbers<[1], [0], [0], [1], [0, 0, 1, 1], [], []>} : vector<64x16xf32>, vector<16x32xf32>, vector<64x32xf32> -> vector<64x32xf32>
    %28 = vector.shape_cast %27 : vector<64x32xf32> to vector<4x16x32xf32>
    %c0_25 = arith.constant 0 : index
    %c0_26 = arith.constant 0 : index
    %c0_27 = arith.constant 0 : index
    %29 = vector.load %arg6[%c0_25, %c0_26, %c0_27] : memref<4x16x32xf32, #tpu.memory_space<vmem>>, vector<4x16x32xf32>
    tpu.vector_store %arg6[%c0_25, %c0_26, %c0_27], %28 {strides = array<i32>} : memref<4x16x32xf32, #tpu.memory_space<vmem>>, vector<4x16x32xf32>,
    %c0_28 = arith.constant 0 : index
    %c0_29 = arith.constant 0 : index
    %c0_30 = arith.constant 0 : index
    %30 = vector.load %arg6[%c0_28, %c0_29, %c0_30] : memref<4x16x32xf32, #tpu.memory_space<vmem>>, vector<1x16x32xf32>
    %31 = vector.shape_cast %30 : vector<1x16x32xf32> to vector<16x32xf32>
    %32 = tpu.transpose %31, [1, 0] : vector<16x32xf32> -> vector<32x16xf32>
    %c0_31 = arith.constant 0 : index
    %c0_32 = arith.constant 0 : index
    %c0_33 = arith.constant 0 : index
    %33 = vector.load %arg7[%c0_31, %c0_32, %c0_33] : memref<4x32x16xf32, #tpu.memory_space<vmem>>, vector<1x32x16xf32>
    %34 = vector.shape_cast %33 : vector<1x32x16xf32> to vector<32x16xf32>
    %35 = vector.shape_cast %32 : vector<32x16xf32> to vector<1x32x16xf32>
    tpu.vector_store %arg7[%c0_31, %c0_32, %c0_33], %35 {strides = array<i32>} : memref<4x32x16xf32, #tpu.memory_space<vmem>>, vector<1x32x16xf32>,
    %c1_34 = arith.constant 1 : index
    %c0_35 = arith.constant 0 : index
    %c0_36 = arith.constant 0 : index
    %36 = vector.load %arg6[%c1_34, %c0_35, %c0_36] : memref<4x16x32xf32, #tpu.memory_space<vmem>>, vector<1x16x32xf32>
    %37 = vector.shape_cast %36 : vector<1x16x32xf32> to vector<16x32xf32>
    %38 = tpu.transpose %37, [1, 0] : vector<16x32xf32> -> vector<32x16xf32>
    %c1_37 = arith.constant 1 : index
    %c0_38 = arith.constant 0 : index
    %c0_39 = arith.constant 0 : index
    %39 = vector.load %arg7[%c1_37, %c0_38, %c0_39] : memref<4x32x16xf32, #tpu.memory_space<vmem>>, vector<1x32x16xf32>
    %40 = vector.shape_cast %39 : vector<1x32x16xf32> to vector<32x16xf32>
    %41 = vector.shape_cast %38 : vector<32x16xf32> to vector<1x32x16xf32>
    tpu.vector_store %arg7[%c1_37, %c0_38, %c0_39], %41 {strides = array<i32>} : memref<4x32x16xf32, #tpu.memory_space<vmem>>, vector<1x32x16xf32>,
    %c2_40 = arith.constant 2 : index
    %c0_41 = arith.constant 0 : index
    %c0_42 = arith.constant 0 : index
    %42 = vector.load %arg6[%c2_40, %c0_41, %c0_42] : memref<4x16x32xf32, #tpu.memory_space<vmem>>, vector<1x16x32xf32>
    %43 = vector.shape_cast %42 : vector<1x16x32xf32> to vector<16x32xf32>
    %44 = tpu.transpose %43, [1, 0] : vector<16x32xf32> -> vector<32x16xf32>
    %c2_43 = arith.constant 2 : index
    %c0_44 = arith.constant 0 : index
    %c0_45 = arith.constant 0 : index
    %45 = vector.load %arg7[%c2_43, %c0_44, %c0_45] : memref<4x32x16xf32, #tpu.memory_space<vmem>>, vector<1x32x16xf32>
    %46 = vector.shape_cast %45 : vector<1x32x16xf32> to vector<32x16xf32>
    %47 = vector.shape_cast %44 : vector<32x16xf32> to vector<1x32x16xf32>
    tpu.vector_store %arg7[%c2_43, %c0_44, %c0_45], %47 {strides = array<i32>} : memref<4x32x16xf32, #tpu.memory_space<vmem>>, vector<1x32x16xf32>,
    %c3_46 = arith.constant 3 : index
    %c0_47 = arith.constant 0 : index
    %c0_48 = arith.constant 0 : index
    %48 = vector.load %arg6[%c3_46, %c0_47, %c0_48] : memref<4x16x32xf32, #tpu.memory_space<vmem>>, vector<1x16x32xf32>
    %49 = vector.shape_cast %48 : vector<1x16x32xf32> to vector<16x32xf32>
    %50 = tpu.transpose %49, [1, 0] : vector<16x32xf32> -> vector<32x16xf32>
    %c3_49 = arith.constant 3 : index
    %c0_50 = arith.constant 0 : index
    %c0_51 = arith.constant 0 : index
    %51 = vector.load %arg7[%c3_49, %c0_50, %c0_51] : memref<4x32x16xf32, #tpu.memory_space<vmem>>, vector<1x32x16xf32>
    %52 = vector.shape_cast %51 : vector<1x32x16xf32> to vector<32x16xf32>
    %53 = vector.shape_cast %50 : vector<32x16xf32> to vector<1x32x16xf32>
    tpu.vector_store %arg7[%c3_49, %c0_50, %c0_51], %53 {strides = array<i32>} : memref<4x32x16xf32, #tpu.memory_space<vmem>>, vector<1x32x16xf32>,
    %c0_52 = arith.constant 0 : index
    %c0_53 = arith.constant 0 : index
    %c0_54 = arith.constant 0 : index
    %54 = vector.load %arg7[%c0_52, %c0_53, %c0_54] : memref<4x32x16xf32, #tpu.memory_space<vmem>>, vector<4x32x16xf32>
    %55 = vector.shape_cast %54 : vector<4x32x16xf32> to vector<128x16xf32>
    %c0_55 = arith.constant 0 : index
    %c0_56 = arith.constant 0 : index
    %56 = vector.load %arg3[%c0_55, %c0_56] : memref<16x128xf32, #tpu.memory_space<vmem>>, vector<16x128xf32>
    %cst_57 = arith.constant dense<0.000000e+00> : vector<128x128xf32>
    %57 = tpu.matmul %55, %56, %cst_57 {dimension_numbers = #tpu.dot_dimension_numbers<[1], [0], [0], [1], [0, 0, 1, 1], [], []>} : vector<128x16xf32>, vector<16x128xf32>, vector<128x128xf32> -> vector<128x128xf32>
    %58 = vector.shape_cast %57 : vector<128x128xf32> to vector<4x32x128xf32>
    %c0_58 = arith.constant 0 : index
    %c0_59 = arith.constant 0 : index
    %c0_60 = arith.constant 0 : index
    %59 = vector.load %arg4[%c0_58, %c0_59, %c0_60] : memref<4x32x128xf32, #tpu.memory_space<vmem>>, vector<4x32x128xf32>
    tpu.vector_store %arg4[%c0_58, %c0_59, %c0_60], %58 {strides = array<i32>} : memref<4x32x128xf32, #tpu.memory_space<vmem>>, vector<4x32x128xf32>,
    return
  }
  func.func @transform_0(%arg0: i32) -> (i32, i32, i32) {
    %c0_i32 = arith.constant 0 : i32
    %c0_i32_0 = arith.constant 0 : i32
    %c0_i32_1 = arith.constant 0 : i32
    return %arg0, %c0_i32, %c0_i32_0 : i32, i32, i32
  }
  func.func @transform_1(%arg0: i32) -> (i32, i32) {
    %c0_i32 = arith.constant 0 : i32
    %c0_i32_0 = arith.constant 0 : i32
    %c0_i32_1 = arith.constant 0 : i32
    return %c0_i32, %c0_i32_0 : i32, i32
  }
  func.func @transform_2(%arg0: i32) -> (i32, i32) {
    %c0_i32 = arith.constant 0 : i32
    %c0_i32_0 = arith.constant 0 : i32
    %c0_i32_1 = arith.constant 0 : i32
    return %c0_i32, %c0_i32_0 : i32, i32
  }
  func.func @transform_3(%arg0: i32) -> (i32, i32, i32) {
    %c0_i32 = arith.constant 0 : i32
    %c0_i32_0 = arith.constant 0 : i32
    %c0_i32_1 = arith.constant 0 : i32
    return %arg0, %c0_i32, %c0_i32_0 : i32, i32, i32
  }
}

</mosaic_0001>

<bundles_post_ra>
// kernel: tpu_custom_call.1
= control target key start
LH: loop header
LB: loop body
LE: loop exit
PB: predicated region body
PF: predicated region fallthrough
CT: control target
= control target key end

     0   :  { %8 = vsyncpa [#allocation6], 0  ;;  %s1725_s0 = inlined_call_operand.hbm [shape: f32[8,16,16], index: 0, kind: input, shape index: {}]   ;;  %s1726_s1 = inlined_call_operand.hbm [shape: f32[16,32], index: 1, kind: input, shape index: {}]   ;;  %s1727_s2 = inlined_call_operand.hbm [shape: f32[16,128], index: 2, kind: input, shape index: {}]   ;;  %s1728_s3 = inlined_call_operand.hbm [shape: f32[8,32,128], index: 3, kind: output, shape index: {}]  }
   0x1   :  { %10 = vsyncpa [#allocation6 + $0x1], 0 }
   0x2   :  { %11 = vsyncpa [#allocation9], 0 }
   0x3   :  { %12 = vsyncpa [#allocation7], 0 }
   0x4   :  { %14 = vsyncpa [#allocation7 + $0x1], 0  ;;  %s1406_s12 = smov 0   ;;  %s1408_s13 = smov 0  }
   0x5   :  { %s1410_s14 = smov 0   ;;  %s1412_s15 = smov 0  }
   0x6 LB: > { %s1427_s16 = sadd.s32 4294967295, %s1376_s15   ;;  %s1012_s17 = sadd.s32 4294967294, %s1376_s15   ;;  %s1376_s15 = sphi %s1412_s15, %s1748_s15   ;;  %s1372_s14 = sphi %s1410_s14, %s1747_s14   ;;  %s1368_s13 = sphi %s1408_s13, %s1746_s13   ;;  %s1364_s12 = sphi %s1406_s12, %s1745_s12  }
   0x7   : > { %p40_p0 = scmp.ne.s32.totalorder %s1368_s13, %s1364_s12  ;;  %p1729_p1 = scmp.eq.s32.totalorder %s1427_s16, 0 }
   0x8   : > { %p112_p3 = scmp.eq.s32.totalorder %s1012_s17, 1  ;;  %p1013_p5 = scmp.ge.s32.totalorder %s1376_s15, 1 }
   0x9   : > { %p1436_p4 = por %p1729_p1, %p40_p0  ;;  %p119_p7 = scmp.lt.s32.totalorder %s1376_s15, 3 }
   0xa   : > { %p1441_p6 = por %p112_p3, %p40_p0  ;;  %s1378_s21 = smov [#allocation8]  }
   0xb   : > { %s1732_s18 = scalar_select %p1436_p4, 1, 0 }
   0xc   : > { %s1733_s19 = scalar_select %p1441_p6, 1, 0 }
   0xd   : > { %p1446_p8 = pnand %p1013_p5, %p119_p7  ;;  %s131_s22 = sshll.u32 %s1378_s21, 4  ;;  %s1450_s22 = int_to_ptr.vmem [resolvable:$true] %s131_s22 }
   0xe   : > { %s1379_s24 = smov [#allocation10]   ;;  %s1220_s28 = scalar_lea.hbm %s1726_s1, 256 }
   0xf   : > { %p1160_p9 = pneg %p1446_p8  ;;  %s144_s25 = sshll.u32 %s1379_s24, 4  ;;  %s1461_s25 = int_to_ptr.vmem [resolvable:$true] %s144_s25 }
  0x10   : > { %p1221_p12 = scmp.ne.s32.totalorder %s1726_s1, %s1220_s28  ;;  %p1227_p5 = scmp.lt.u32.totalorder %s1220_s28, %s1726_s1 }
  0x11   : > { %p1457_p11 = pnand %p1160_p9, %p1729_p1 }
  0x13   : > { %p1222_p13 = pneg %p1457_p11 }
  0x15   : > { %p1223_p0 = pnand %p1222_p13, %p1221_p12 }
  0x17   : > { %p1224_p3 = pneg %p1223_p0 }
  0x19   : > { %p1229_p7 = pnand %p1227_p5, %p1224_p3 }
  0x1b   : > { %1232 = shalt.err (!%p1229_p7)
}
  0x1c   : > { %s1233_s6 = scalar_lea.vmem %s1450_s22, 256  ;;  %p1241_p2 = scmp.lt.s32.totalorder %s1450_s22, %s1450_s22 }
  0x1d   : > { %p1234_p9 = scmp.ne.s32.totalorder %s1450_s22, %s1233_s6  ;;  %p1242_p12 = scmp.lt.s32.totalorder %s1233_s6, %s1233_s6 }
  0x1f   : > { %p1236_p10 = pnand %p1234_p9, %p1222_p13  ;;  %p1243_p0 = por %p1242_p12, %p1241_p2 }
  0x21   : > { %p1237_p1 = pneg %p1236_p10 }
  0x23   : > { %p1244_p6 = pnand %p1243_p0, %p1237_p1 }
  0x25   : > { %1247 = shalt.err (!%p1244_p6)
}
  0x26   : > { %s1380_s7 = smov 128   ;;  %s1381_s8 = smov 8  }
  0x27   : > { %1163 = dma.hbm_to_vmem [thread:$0]  (!%p1457_p11), %s1726_s1, 256, %s1450_s22, [#allocation9], %s1380_s7, %s1380_s7, %s1381_s8  }
  0x28   : > { %s1248_s21 = scalar_lea.hbm %s1727_s2, 256 }
  0x29   : > { %p1249_p1 = scmp.ne.s32.totalorder %s1727_s2, %s1248_s21  ;;  %p1255_p10 = scmp.lt.u32.totalorder %s1248_s21, %s1727_s2 }
  0x2b   : > { %p1251_p2 = pnand %p1249_p1, %p1222_p13 }
  0x2d   : > { %p1252_p6 = pneg %p1251_p2 }
  0x2f   : > { %p1257_p3 = pnand %p1255_p10, %p1252_p6 }
  0x31   : > { %1260 = shalt.err (!%p1257_p3)
}
  0x32   : > { %s1261_s22 = scalar_lea.vmem %s1461_s25, 256  ;;  %p1269_p12 = scmp.lt.s32.totalorder %s1461_s25, %s1461_s25 }
  0x33   : > { %p1262_p5 = scmp.ne.s32.totalorder %s1461_s25, %s1261_s22  ;;  %p1270_p0 = scmp.lt.s32.totalorder %s1261_s22, %s1261_s22 }
  0x35   : > { %p1264_p7 = pnand %p1262_p5, %p1222_p13  ;;  %p1271_p1 = por %p1270_p0, %p1269_p12 }
  0x37   : > { %p1265_p9 = pneg %p1264_p7 }
  0x39   : > { %p1272_p2 = pnand %p1271_p1, %p1265_p9 }
  0x3b   : > { %1275 = shalt.err (!%p1272_p2)
}
  0x3c   : > { %1166 = dma.hbm_to_vmem [thread:$0]  (!%p1457_p11), %s1727_s2, 256, %s1461_s25, [#allocation9], %s1380_s7, %s1380_s7, %s1381_s8  }
  0x3d   : > { %s1522_s23 = sadd.s32 1, %s1376_s15   ;;  %s27_s4 = sadd.s32 1, %s1372_s14 }
  0x3e   : > { %s24_s5 = ssub.s32 %s1376_s15, %s1522_s23  ;;  %p34_p13 = scmp.ne.s32.totalorder %s1372_s14, %s1368_s13 }
  0x3f   : > { %p25_p6 = scmp.eq.s32.totalorder %s24_s5, 0  ;;  %p35_p10 = scmp.eq.s32.totalorder %s1376_s15, 0 }
  0x40   : > { %p1736_p3 = scmp.eq.s32.totalorder %s1427_s16, 1  ;;  %p1177_p7 = scmp.lt.s32.totalorder %s1376_s15, 2 }
  0x41   : > { %s1538_s9 = scalar_select %p25_p6, %s1372_s14, %s27_s4  }
  0x42   : > { %p1532_p5 = por %p1736_p3, %p34_p13  ;;  %p36_p9 = por %p35_p10, %p34_p13 }
  0x43   : > { %s158_s10 = sand.u32 1, %s1372_s14   ;;  %s1063_s25 = sshll.u32 %s1376_s15, 10 }
  0x44   : > { %s1737_s6 = scalar_select %p1532_p5, 1, 0 }
  0x45   : > { %s1017_s11 = sshll.u32 %s158_s10, 6  ;;  %s1545_s24 = scalar_lea.hbm %s1725_s0, %s1063_s25 }
  0x46   : > { %s162_s26 = scalar_lea.vmem [#allocation5], %s1017_s11  ;;  %p1549_p11 = pnand %p1177_p7, %p36_p9 }
  0x47   : > { %s170_s27 = sshll.u32 %s162_s26, 4  ;;  %s1553_s22 = scalar_lea.sflag [#allocation6], %s158_s10  ;;  %s1547_s27 = int_to_ptr.vmem [resolvable:$true] %s170_s27 }
  0x48   : > { %s1276_s29 = scalar_lea.hbm %s1545_s24, 1024  ;;  %p1278_p0 = pneg %p1549_p11 }
  0x49   : > { %p1277_p12 = scmp.ne.s32.totalorder %s1545_s24, %s1276_s29  ;;  %s1281_s5 = scalar_lea.hbm %s1725_s0, 2048 }
  0x4a   : > { %p1282_p13 = scmp.lt.u32.totalorder %s1545_s24, %s1725_s0  ;;  %p1283_p6 = scmp.lt.u32.totalorder %s1281_s5, %s1276_s29 }
  0x4b   : > { %p1279_p1 = pnand %p1278_p0, %p1277_p12  ;;  %p1285_p3 = scmp.lt.u32.totalorder %s1276_s29, %s1545_s24 }
  0x4c   : > { %p1284_p10 = por %p1283_p6, %p1282_p13 }
  0x4d   : > { %p1280_p2 = pneg %p1279_p1 }
  0x4e   : > { %p1286_p7 = por %p1285_p3, %p1284_p10 }
  0x50   : > { %p1287_p9 = pnand %p1286_p7, %p1280_p2 }
  0x52   : > { %1290 = shalt.err (!%p1287_p9)
}
  0x53   : > { %s1291_s10 = scalar_lea.vmem %s1547_s27, 1024  ;;  %s1382_s17 = smov [#allocation5]  }
  0x54   : > { %p1292_p12 = scmp.ne.s32.totalorder %s1547_s27, %s1291_s10  ;;  %s1296_s21 = sshll.u32 %s1382_s17, 4  ;;  %s1297_s21 = int_to_ptr.vmem [resolvable:$false] %s1296_s21 }
  0x55   : > { %s1298_s26 = scalar_lea.vmem %s1297_s21, 2048  ;;  %p1299_p4 = scmp.lt.s32.totalorder %s1547_s27, %s1297_s21 }
  0x56   : > { %p1294_p1 = pnand %p1292_p12, %p1278_p0  ;;  %p1300_p13 = scmp.lt.s32.totalorder %s1298_s26, %s1291_s10 }
  0x58   : > { %p1295_p5 = pneg %p1294_p1  ;;  %p1301_p6 = por %p1300_p13, %p1299_p4 }
  0x5a   : > { %p1302_p10 = pnand %p1301_p6, %p1295_p5 }
  0x5c   : > { %1305 = shalt.err (!%p1302_p10)
}
  0x5d   : > { %1170 = dma.hbm_to_vmem [thread:$0]  (!%p1549_p11), %s1545_s24, 1024, %s1547_s27, %s1553_s22, %s1380_s7, %s1380_s7, %s1381_s8  }
  0x5e   : > { %182 = sbr.rel (%p1446_p8) target bundleno = 869 (0x365), region = 32  ;;  %s1587_s29 = sand.u32 (!%p1446_p8), 1, %s1368_s13  }
  0x5f   : > { %s1022_s30 = sshll.u32 (!%p1446_p8), %s1587_s29, 6  ;;  %s185_s4 = scalar_lea.sflag (!%p1446_p8), [#allocation6], %s1587_s29 }
  0x60   : > { %s188_s5 = scalar_lea.vmem (!%p1446_p8), [#allocation5], %s1022_s30  ;;  %p1739_p4 = scmp.ne.s32.totalorder (!%p1446_p8), %s1732_s18, 0 }
  0x65   : > { %1351 = dma.done.wait (%p1739_p4), %s185_s4, 1024  }
  0x66   : > { %1353 = vsyncadd (%p1739_p4), %s185_s4, 4294966272  ;;  %p1740_p5 = scmp.eq.s32.totalorder %s1427_s16, 0 }
  0x68   : > { %1355 = dma.done.wait (%p1740_p5), [#allocation9], 512   ;;  %p1741_p11 = pmov %p1740_p5 }
  0x69   : > { %v221_v0 = vld [vmem:[%s188_s5] sm:$0xff]  ;;  %v1026_v1 = vld [vmem:[%s188_s5 + $0x10] sm:$0xff]  ;;  %v222_v2 = vld [vmem:[%s188_s5 + $0x8] sm:$0xff]  ;;  %vm255_vm0 = vcmask 130048   ;;  %vm511_vm1 = vcmask 261120   ;;  %s1025_s18 = sshll.u32 %s1587_s29, 7 }
  0x6a   : > { %1357 = vsyncadd (%p1741_p11), [#allocation9], 4294966784  ;;  %223 = vxpose.xlu0.b32.start [1/2] (short) (narrow) %v221_v0, 16  ;;  %261 = vxpose.xlu1.b32.start [1/2] (short) (narrow) %v1026_v1, 16  ;;  %v1027_v3 = vld [vmem:[%s188_s5 + $0x18] sm:$0xff]  ;;  %v1028_v4 = vld [vmem:[%s188_s5 + $0x20] sm:$0xff] }
  0x6b   : > { %v1030_v5 = vld [vmem:[%s188_s5 + $0x30] sm:$0xff]  ;;  %v380_v6 = vld [vmem:[#allocation8] sm:$0xff]  ;;  %v381_v7 = vld [vmem:[#allocation8 + $0x8] sm:$0xff]  ;;  %s1656_s20 = scalar_lea.vmem [#allocation11], %s1025_s18  ;;  %s1065_s7 = sshll.u32 %s1427_s16, 11 }
  0x6c   : > { %v1138_v8 = vpack.c.bf16 %v381_v7, %v380_v6  ;;  %v1029_v9 = vld [vmem:[%s188_s5 + $0x28] sm:$0xff]  ;;  %v1031_v10 = vld [vmem:[%s188_s5 + $0x38] sm:$0xff]  ;;  %v694_v39 = vld [vmem:[#allocation10] sm:$0xff]  ;;  %s920_s8 = sshll.u32 %s1656_s20, 4  ;;  %s1677_s28 = scalar_lea.hbm %s1728_s3, %s1065_s7  ;;  %s1679_s8 = int_to_ptr.vmem [resolvable:$true] %s920_s8 }
  0x6d   : > { %v695_v40 = vld [vmem:[#allocation10 + $0x8] sm:$0xff]  ;;  %s906_s22 = scalar_lea.sflag [#allocation7], %s1587_s29  ;;  %s1306_s16 = scalar_lea.vmem %s1679_s8, 2048 }
  0x6e   : > { %224 = vxpose.xlu0.b32.end [2/2] (short) (narrow) %v222_v2, 16  ;;  %262 = vxpose.xlu1.b32.end [2/2] (short) (narrow) %v1027_v3, 16  ;;  %v1142_v41 = vpack.c.bf16 %v695_v40, %v694_v39  ;;  %p1307_p8 = scmp.ne.s32.totalorder %s1679_s8, %s1306_s16  ;;  %p1742_p0 = scmp.ne.s32.totalorder %s1737_s6, 0 }
  0x6f   : > { %1139 = vmatprep.subr.bf16.mxu0 %v1138_v8  ;;  %s1383_s11 = smov [#allocation11]  }
  0x70   : > { %1141 = vmatpush3.bf16.msra.mxu0 %v1138_v8  ;;  %1146 = vmatprep.subr.bf16.mxu1 %v1142_v41  ;;  %p1308_p2 = pnand %p1307_p8, %p1742_p0  ;;  %s1310_s25 = sshll.u32 %s1383_s11, 4  ;;  %s1311_s25 = int_to_ptr.vmem [resolvable:$false] %s1310_s25 }
  0x71   : > { %1143 = vmatprep.subr.bf16.mxu0 %v1142_v41  ;;  %1147 = vmatpush3.bf16.msra.mxu1 %v1142_v41  ;;  %s1312_s10 = scalar_lea.vmem %s1311_s25, 4096  ;;  %p1313_p7 = scmp.lt.s32.totalorder %s1679_s8, %s1311_s25 }
  0x72   : > { %299 = vxpose.xlu0.b32.start [1/2] (short) (narrow) %v1028_v4, 16  ;;  %337 = vxpose.xlu1.b32.start [1/2] (short) (narrow) %v1030_v5, 16  ;;  %p1309_p3 = pneg %p1308_p2  ;;  %p1314_p9 = scmp.lt.s32.totalorder %s1312_s10, %s1306_s16 }
  0x74   : > { %p1315_p12 = por %p1314_p9, %p1313_p7 }
  0x76   : > { %300 = vxpose.xlu0.b32.end [2/2] (short) (narrow) %v1029_v9, 16  ;;  %338 = vxpose.xlu1.b32.end [2/2] (short) (narrow) %v1031_v10, 16  ;;  %p1316_p1 = pnand %p1315_p12, %p1309_p3 }
  0xea   : > { %v239_v11 = vpop.trf.xlu0  ;;  %v277_v12 = vpop.trf.xlu1 }
  0xeb   : > { %256 = vst.msk [vmem:[#allocation2] sm:$0xff] %vm255_vm0, %v239_v11  ;;  %294 = vst.msk [vmem:[#allocation2 + $0x10] sm:$0xff] %vm255_vm0, %v277_v12 }
  0xee   : > { %v240_v13 = vpop.trf.xlu0  ;;  %v278_v14 = vpop.trf.xlu1 }
  0xef   : > { %257 = vst.msk [vmem:[#allocation2 + $0x8] sm:$0xff] %vm255_vm0, %v240_v13  ;;  %295 = vst.msk [vmem:[#allocation2 + $0x18] sm:$0xff] %vm255_vm0, %v278_v14 }
  0xf2   : > { %v315_v15 = vpop.trf.xlu0  ;;  %v372_v16 = vld [vmem:[#allocation2] sm:$0xff]  ;;  %v353_v17 = vpop.trf.xlu1  ;;  %v374_v18 = vld [vmem:[#allocation2 + $0x10] sm:$0xff] }
  0xf3   : > { %332 = vst.msk [vmem:[#allocation2 + $0x20] sm:$0xff] %vm255_vm0, %v315_v15  ;;  %1098 = vmatprep.mubr.msk.f32.mxu0 %vm255_vm0, %v372_v16  ;;  %370 = vst.msk [vmem:[#allocation2 + $0x30] sm:$0xff] %vm255_vm0, %v353_v17 }
  0xf6   : > { %v316_v19 = vpop.trf.xlu0  ;;  %v373_v20 = vld [vmem:[#allocation2 + $0x8] sm:$0xff]  ;;  %v354_v21 = vpop.trf.xlu1  ;;  %v375_v22 = vld [vmem:[#allocation2 + $0x18] sm:$0xff] }
  0xf7   : > { %333 = vst.msk [vmem:[#allocation2 + $0x28] sm:$0xff] %vm255_vm0, %v316_v19  ;;  %1099 = vmatmul.mubr.msk.f32.vlgmr.msra.gmra.mrb[0].mxu0 %vm255_vm0, %v373_v20  ;;  %371 = vst.msk [vmem:[#allocation2 + $0x38] sm:$0xff] %vm255_vm0, %v354_v21 }
  0xf8   : > { %1101 = vmatprep.mubr.msk.f32.mxu0 %vm255_vm0, %v374_v18  ;;  %1145 = vmatpush3.bf16.msra.mxu0 %v1142_v41 }
  0xfa   : > { %v376_v23 = vld [vmem:[#allocation2 + $0x20] sm:$0xff]  ;;  %v378_v24 = vld [vmem:[#allocation2 + $0x30] sm:$0xff] }
  0xfb   : > { %1102 = vmatmul.mubr.msk.f32.gmra.mrb[2].mxu0 %vm255_vm0, %v375_v22 }
  0xfc   : > { %1104 = vmatprep.mubr.msk.f32.mxu0 %vm255_vm0, %v376_v23 }
  0xfe   : > { %v377_v25 = vld [vmem:[#allocation2 + $0x28] sm:$0xff]  ;;  %v379_v26 = vld [vmem:[#allocation2 + $0x38] sm:$0xff] }
  0xff   : > { %1105 = vmatmul.mubr.msk.f32.gmra.mrb[4].mxu0 %vm255_vm0, %v377_v25 }
 0x100   : > { %1107 = vmatprep.mubr.msk.f32.mxu0 %vm255_vm0, %v378_v24 }
 0x103   : > { %1108 = vmatmul.mubr.msk.f32.gmra.mrb[6].mxu0 %vm255_vm0, %v379_v26 }
 0x1ca   : > { %v1100_v27 = vpop.f32.mrb[0].mxu0 }
 0x1cb   : > { %513 = vst.msk [vmem:[#allocation3 + $0x8] sm:$0xff] %vm511_vm1, %v1100_v27  ;;  %v472_v28 = vpop.f32.mrb[1].mxu0 }
 0x1cc   : > { %512 = vst.msk [vmem:[#allocation3] sm:$0xff] %vm511_vm1, %v472_v28 }
 0x1ce   : > { %v1103_v29 = vpop.f32.mrb[2].mxu0 }
 0x1cf   : > { %515 = vst.msk [vmem:[#allocation3 + $0x18] sm:$0xff] %vm511_vm1, %v1103_v29  ;;  %v482_v30 = vpop.f32.mrb[3].mxu0 }
 0x1d0   : > { %514 = vst.msk [vmem:[#allocation3 + $0x10] sm:$0xff] %vm511_vm1, %v482_v30 }
 0x1d2   : > { %v1106_v31 = vpop.f32.mrb[4].mxu0  ;;  %v521_v44 = vld [vmem:[#allocation3 + $0x8] sm:$0xff] }
 0x1d3   : > { %517 = vst.msk [vmem:[#allocation3 + $0x28] sm:$0xff] %vm511_vm1, %v1106_v31  ;;  %v492_v32 = vpop.f32.mrb[5].mxu0  ;;  %v520_v42 = vld [vmem:[#allocation3] sm:$0xff] }
 0x1d4   : > { %516 = vst.msk [vmem:[#allocation3 + $0x20] sm:$0xff] %vm511_vm1, %v492_v32 }
 0x1d6   : > { %v1109_v33 = vpop.f32.mrb[6].mxu0  ;;  %v560_v36 = vld [vmem:[#allocation3 + $0x18] sm:$0xff] }
 0x1d7   : > { %v559_v34 = vld [vmem:[#allocation3 + $0x10] sm:$0xff]  ;;  %519 = vst.msk [vmem:[#allocation3 + $0x38] sm:$0xff] %vm511_vm1, %v1109_v33  ;;  %v502_v35 = vpop.f32.mrb[7].mxu0 }
 0x1d8   : > { %561 = vxpose.xlu0.b32.start [1/2] (short) (narrow) %v559_v34, 32  ;;  %518 = vst.msk [vmem:[#allocation3 + $0x30] sm:$0xff] %vm511_vm1, %v502_v35 }
 0x1da   : > { %v600_v38 = vld [vmem:[#allocation3 + $0x28] sm:$0xff] }
 0x1db   : > { %v599_v37 = vld [vmem:[#allocation3 + $0x20] sm:$0xff] }
 0x1dc   : > { %562 = vxpose.xlu0.b32.end [2/2] (short) (narrow) %v560_v36, 32  ;;  %601 = vxpose.xlu1.b32.start [1/2] (short) (narrow) %v599_v37, 32 }
 0x1de   : > { %v640_v45 = vld [vmem:[#allocation3 + $0x38] sm:$0xff] }
 0x1df   : > { %v639_v43 = vld [vmem:[#allocation3 + $0x30] sm:$0xff] }
 0x1e0   : > { %602 = vxpose.xlu1.b32.end [2/2] (short) (narrow) %v600_v38, 32 }
 0x1e5   : > { %522 = vxpose.xlu0.b32.start [1/2] (short) (narrow) %v520_v42, 32 }
 0x1e9   : > { %523 = vxpose.xlu0.b32.end [2/2] (short) (narrow) %v521_v44, 32  ;;  %641 = vxpose.xlu1.b32.start [1/2] (short) (narrow) %v639_v43, 32 }
 0x1ed   : > { %642 = vxpose.xlu1.b32.end [2/2] (short) (narrow) %v640_v45, 32 }
 0x258   : > { %v577_v46 = vpop.trf.xlu0 }
 0x259   : > { %594 = vst.msk [vmem:[#allocation4 + $0x20] sm:$0xff] %vm255_vm0, %v577_v46 }
 0x25c   : > { %v617_v47 = vpop.trf.xlu1  ;;  %v578_v48 = vpop.trf.xlu0 }
 0x25d   : > { %634 = vst.msk [vmem:[#allocation4 + $0x40] sm:$0xff] %vm255_vm0, %v617_v47  ;;  %595 = vst.msk [vmem:[#allocation4 + $0x28] sm:$0xff] %vm255_vm0, %v578_v48 }
 0x260   : > { %v618_v49 = vpop.trf.xlu1  ;;  %v579_v50 = vpop.trf.xlu0  ;;  %v682_v51 = vld [vmem:[#allocation4 + $0x20] sm:$0xff] }
 0x261   : > { %635 = vst.msk [vmem:[#allocation4 + $0x48] sm:$0xff] %vm255_vm0, %v618_v49  ;;  %596 = vst.msk [vmem:[#allocation4 + $0x30] sm:$0xff] %vm255_vm0, %v579_v50  ;;  %1120 = vmatprep.mubr.msk.f32.mxu1 %vm255_vm0, %v682_v51 }
 0x264   : > { %v619_v52 = vpop.trf.xlu1  ;;  %v580_v53 = vpop.trf.xlu0  ;;  %v683_v54 = vld [vmem:[#allocation4 + $0x28] sm:$0xff]  ;;  %v686_v61 = vld [vmem:[#allocation4 + $0x40] sm:$0xff] }
 0x265   : > { %636 = vst.msk [vmem:[#allocation4 + $0x50] sm:$0xff] %vm255_vm0, %v619_v52  ;;  %597 = vst.msk [vmem:[#allocation4 + $0x38] sm:$0xff] %vm255_vm0, %v580_v53  ;;  %1121 = vmatmul.mubr.msk.f32.vlgmr.msra.gmra.mrb[0].mxu1 %vm255_vm0, %v683_v54 }
 0x268   : > { %v620_v55 = vpop.trf.xlu1  ;;  %v538_v56 = vpop.trf.xlu0  ;;  %v684_v57 = vld [vmem:[#allocation4 + $0x30] sm:$0xff]  ;;  %v687_v63 = vld [vmem:[#allocation4 + $0x48] sm:$0xff] }
 0x269   : > { %637 = vst.msk [vmem:[#allocation4 + $0x58] sm:$0xff] %vm255_vm0, %v620_v55  ;;  %554 = vst.msk [vmem:[#allocation4] sm:$0xff] %vm255_vm0, %v538_v56  ;;  %1123 = vmatprep.mubr.msk.f32.mxu1 %vm255_vm0, %v684_v57 }
 0x26c   : > { %v657_v58 = vpop.trf.xlu1  ;;  %v685_v59 = vld [vmem:[#allocation4 + $0x38] sm:$0xff]  ;;  %v539_v60 = vpop.trf.xlu0  ;;  %v688_v2 = vld [vmem:[#allocation4 + $0x50] sm:$0xff] }
 0x26d   : > { %674 = vst.msk [vmem:[#allocation4 + $0x60] sm:$0xff] %vm255_vm0, %v657_v58  ;;  %1124 = vmatmul.mubr.msk.f32.gmra.mrb[2].mxu1 %vm255_vm0, %v685_v59  ;;  %555 = vst.msk [vmem:[#allocation4 + $0x8] sm:$0xff] %vm255_vm0, %v539_v60 }
 0x26e   : > { %1126 = vmatprep.mubr.msk.f32.mxu1 %vm255_vm0, %v686_v61 }
 0x270   : > { %v658_v62 = vpop.trf.xlu1  ;;  %v540_v0 = vpop.trf.xlu0  ;;  %v678_v1 = vld [vmem:[#allocation4] sm:$0xff]  ;;  %v689_v4 = vld [vmem:[#allocation4 + $0x58] sm:$0xff] }
 0x271   : > { %675 = vst.msk [vmem:[#allocation4 + $0x68] sm:$0xff] %vm255_vm0, %v658_v62  ;;  %1127 = vmatmul.mubr.msk.f32.gmra.mrb[4].mxu1 %vm255_vm0, %v687_v63  ;;  %556 = vst.msk [vmem:[#allocation4 + $0x10] sm:$0xff] %vm255_vm0, %v540_v0  ;;  %1114 = vmatprep.mubr.msk.f32.mxu0 %vm255_vm0, %v678_v1 }
 0x272   : > { %1129 = vmatprep.mubr.msk.f32.mxu1 %vm255_vm0, %v688_v2 }
 0x274   : > { %v659_v3 = vpop.trf.xlu1  ;;  %v690_v5 = vld [vmem:[#allocation4 + $0x60] sm:$0xff]  ;;  %v541_v6 = vpop.trf.xlu0  ;;  %v679_v7 = vld [vmem:[#allocation4 + $0x8] sm:$0xff] }
 0x275   : > { %676 = vst.msk [vmem:[#allocation4 + $0x70] sm:$0xff] %vm255_vm0, %v659_v3  ;;  %1130 = vmatmul.mubr.msk.f32.gmra.mrb[6].mxu1 %vm255_vm0, %v689_v4  ;;  %557 = vst.msk [vmem:[#allocation4 + $0x18] sm:$0xff] %vm255_vm0, %v541_v6  ;;  %1115 = vmatmul.mubr.msk.f32.vlgmr.msra.gmra.mrb[8].mxu0 %vm255_vm0, %v679_v7 }
 0x276   : > { %1132 = vmatprep.mubr.msk.f32.mxu1 %vm255_vm0, %v690_v5 }
 0x278   : > { %v660_v8 = vpop.trf.xlu1  ;;  %v691_v9 = vld [vmem:[#allocation4 + $0x68] sm:$0xff]  ;;  %v680_v10 = vld [vmem:[#allocation4 + $0x10] sm:$0xff] }
 0x279   : > { %677 = vst.msk [vmem:[#allocation4 + $0x78] sm:$0xff] %vm255_vm0, %v660_v8  ;;  %1133 = vmatmul.mubr.msk.f32.gmra.mrb[8].mxu1 %vm255_vm0, %v691_v9  ;;  %1117 = vmatprep.mubr.msk.f32.mxu0 %vm255_vm0, %v680_v10 }
 0x27c   : > { %v692_v11 = vld [vmem:[#allocation4 + $0x70] sm:$0xff]  ;;  %v681_v12 = vld [vmem:[#allocation4 + $0x18] sm:$0xff] }
 0x27d   : > { %1135 = vmatprep.mubr.msk.f32.mxu1 %vm255_vm0, %v692_v11  ;;  %1118 = vmatmul.mubr.msk.f32.gmra.mrb[10].mxu0 %vm255_vm0, %v681_v12 }
 0x280   : > { %v693_v13 = vld [vmem:[#allocation4 + $0x78] sm:$0xff] }
 0x281   : > { %1136 = vmatmul.mubr.msk.f32.gmra.mrb[10].mxu1 %vm255_vm0, %v693_v13 }
 0x338   : > { %v1122_v14 = vpop.f32.mrb[0].mxu1 }
 0x339   : > { %894 = vst [vmem:[%s1656_s20 + $0x28] sm:$0xff] %v1122_v14  ;;  %v830_v15 = vpop.f32.mrb[1].mxu1 }
 0x33a   : > { %893 = vst [vmem:[%s1656_s20 + $0x20] sm:$0xff] %v830_v15 }
 0x340   : > { %v1125_v16 = vpop.f32.mrb[2].mxu1 }
 0x341   : > { %896 = vst [vmem:[%s1656_s20 + $0x38] sm:$0xff] %v1125_v16  ;;  %v840_v17 = vpop.f32.mrb[3].mxu1 }
 0x342   : > { %895 = vst [vmem:[%s1656_s20 + $0x30] sm:$0xff] %v840_v17 }
 0x344   : > { %v1128_v18 = vpop.f32.mrb[4].mxu1 }
 0x345   : > { %898 = vst [vmem:[%s1656_s20 + $0x48] sm:$0xff] %v1128_v18  ;;  %v850_v19 = vpop.f32.mrb[5].mxu1 }
 0x346   : > { %897 = vst [vmem:[%s1656_s20 + $0x40] sm:$0xff] %v850_v19 }
 0x348   : > { %v1131_v20 = vpop.f32.mrb[6].mxu1  ;;  %v1116_v21 = vpop.f32.mrb[8].mxu0 }
 0x349   : > { %900 = vst [vmem:[%s1656_s20 + $0x58] sm:$0xff] %v1131_v20  ;;  %v860_v22 = vpop.f32.mrb[7].mxu1  ;;  %890 = vst [vmem:[%s1656_s20 + $0x8] sm:$0xff] %v1116_v21  ;;  %v810_v23 = vpop.f32.mrb[9].mxu0 }
 0x34a   : > { %899 = vst [vmem:[%s1656_s20 + $0x50] sm:$0xff] %v860_v22  ;;  %889 = vst [vmem:[%s1656_s20] sm:$0xff] %v810_v23 }
 0x34c   : > { %v1134_v24 = vpop.f32.mrb[8].mxu1 }
 0x34d   : > { %902 = vst [vmem:[%s1656_s20 + $0x68] sm:$0xff] %v1134_v24  ;;  %v870_v25 = vpop.f32.mrb[9].mxu1 }
 0x34e   : > { %901 = vst [vmem:[%s1656_s20 + $0x60] sm:$0xff] %v870_v25 }
 0x350   : > { %v1119_v26 = vpop.f32.mrb[10].mxu0 }
 0x351   : > { %892 = vst [vmem:[%s1656_s20 + $0x18] sm:$0xff] %v1119_v26  ;;  %v820_v27 = vpop.f32.mrb[11].mxu0 }
 0x352   : > { %891 = vst [vmem:[%s1656_s20 + $0x10] sm:$0xff] %v820_v27 }
 0x354   : > { %v1137_v28 = vpop.f32.mrb[10].mxu1 }
 0x355   : > { %904 = vst [vmem:[%s1656_s20 + $0x78] sm:$0xff] %v1137_v28  ;;  %v880_v29 = vpop.f32.mrb[11].mxu1 }
 0x356   : > { %903 = vst [vmem:[%s1656_s20 + $0x70] sm:$0xff] %v880_v29 }
 0x357   : > { %1319 = shalt.err (!%p1316_p1)
}
 0x358   : > { %s1320_s17 = scalar_lea.hbm %s1677_s28, 2048  ;;  %s1324_s30 = scalar_lea.hbm %s1728_s3, 4096 }
 0x359   : > { %p1321_p13 = scmp.ne.s32.totalorder %s1677_s28, %s1320_s17  ;;  %p1325_p4 = scmp.lt.u32.totalorder %s1677_s28, %s1728_s3 }
 0x35a   : > { %p1326_p5 = scmp.lt.u32.totalorder %s1324_s30, %s1320_s17  ;;  %p1328_p8 = scmp.lt.u32.totalorder %s1320_s17, %s1677_s28 }
 0x35b   : > { %p1322_p6 = pnand %p1321_p13, %p1742_p0 }
 0x35c   : > { %p1327_p11 = por %p1326_p5, %p1325_p4 }
 0x35d   : > { %p1323_p10 = pneg %p1322_p6 }
 0x35e   : > { %p1329_p2 = por %p1328_p8, %p1327_p11 }
 0x360   : > { %p1330_p3 = pnand %p1329_p2, %p1323_p10 }
 0x362   : > { %1333 = shalt.err (!%p1330_p3)
}
 0x363   : > { %s1384_s18 = smov 128   ;;  %s1385_s20 = smov 8  }
 0x364   : > { %1158 = dma.vmem_to_hbm [thread:$0]  (%p1742_p0), %s1679_s8, 2048, %s1677_s28, %s906_s22, %s1384_s18, %s1384_s18, %s1385_s20  }
 0x365 PF: > { %s935_s7 = sand.u32 1, %s1364_s12   ;;  %p1743_p7 = scmp.ne.s32.totalorder %s1733_s19, 0 }
 0x366   : > { %p1744_p9 = scmp.ge.s32.totalorder %s1376_s15, 2  ;;  %s936_s24 = scalar_lea.sflag [#allocation7], %s935_s7 }
 0x368   : > { %p1172_p12 = pnand %p1744_p9, %p1743_p7 }
 0x36a   : > { %1359 = dma.done.wait (!%p1172_p12), %s936_s24, 2048  }
 0x36b   : > { %1361 = vsyncadd (!%p1172_p12), %s936_s24, 4294965248  ;;  %p17_p1 = scmp.ge.s32.totalorder %s1522_s23, 4   ;;  %s1745_s12 = smov %s1368_s13 }
 0x36c   : > { %s1746_s13 = smov %s1372_s14  ;;  %s1747_s14 = smov %s1538_s9 }
 0x36d   : > { %s1748_s15 = smov %s1522_s23  ;;  %19 = sbr.rel (!%p17_p1) target bundleno = 6 (0x6), region = 97 }
 0x374   :  { %941 = vsyncpa [#allocation6], 1 }
 0x375   :  { %943 = vsyncpa [#allocation6 + $0x1], 1 }
 0x376   :  { %944 = vsyncpa [#allocation9], 1 }
 0x377   :  { %945 = vsyncpa [#allocation7], 1 }
 0x378   :  { %947 = vsyncpa [#allocation7 + $0x1], 1 }

</bundles_post_ra>
